<compile_context>
chip_gen: v7x
topology: tpu7x:2x2x1
jax: 0.10.0
libtpu: 0.0.40
codegen_flags: <defaults>
</compile_context>

<pallas_src>
import jax
import jax.numpy as jnp
from jax import lax
from jax.experimental import pallas as pl
from jax.experimental.pallas import tpu as pltpu

EPS = 1e-9


def _round_up(x, m):
    return ((x + m - 1) // m) * m


def _ard_kernel(sv_ref, inv_ls_ref, x1_ref, x2_ref, o_ref):
    # sv_ref: (1,) in SMEM; inv_ls_ref: (1, D); x1_ref: (tm, D); x2_ref: (tn, D)
    inv_ls = inv_ls_ref[...]                                # (1, D) precomputed 1/(|ls|+eps)
    a = x1_ref[...] * inv_ls                                # (tm, D)
    b = x2_ref[...] * inv_ls                                # (tn, D)

    # Cross term on the MXU, contracting the last dim of both operands
    # (transposed-RHS matmul: no explicit relayout of b).
    ab = lax.dot_general(a, b, (((1,), (1,)), ((), ())),
                         preferred_element_type=jnp.float32)            # (tm, tn)

    # -0.5 * row norms: (tm, 1) lane reduction, scaled on the small vector.
    ha2 = -0.5 * jnp.sum(a * a, axis=-1, keepdims=True)                 # (tm, 1)
    # -0.5 * column norms directly as a lane-dense (1, tn) row via a second
    # transposed-RHS contraction (avoids transposing a (tn, 1) column).
    ones_row = jnp.ones((1, b.shape[-1]), jnp.float32)
    hb2 = -0.5 * lax.dot_general(ones_row, b * b, (((1,), (1,)), ((), ())),
                                 preferred_element_type=jnp.float32)    # (1, tn)

    # -0.5 * sqdist = ab - 0.5*a2 - 0.5*b2 ; sqdist >= 0  <=>  arg <= 0.
    arg = jnp.minimum(ab + ha2 + hb2, 0.0)                              # (tm, tn)
    sv = jnp.abs(sv_ref[0])
    o_ref[...] = sv * jnp.exp(arg)


def ard_kernel_forward(x1, x2, length_scales, signal_variance, *, tm=512, tn=1024):
    """Compute the ARD covariance matrix (N1, N2) with a Pallas TPU kernel."""
    x1 = jnp.asarray(x1, jnp.float32)
    x2 = jnp.asarray(x2, jnp.float32)
    n1, d = x1.shape
    n2, d2 = x2.shape
    assert d == d2, "feature dims must match"

    # Effective tiles: rows sublane-aligned (8), cols lane-dense (128).
    tm_eff = min(tm, _round_up(n1, 8))
    tn_eff = min(tn, _round_up(n2, 128))

    # Megacore: if one tile would cover the whole output, split the row axis
    # so both TensorCores get work on 2-TC parts.
    if pl.cdiv(n1, tm_eff) == 1 and pl.cdiv(n2, tn_eff) == 1 and n1 > 8:
        tm_eff = _round_up(pl.cdiv(n1, 2), 8)

    grid = (pl.cdiv(n1, tm_eff), pl.cdiv(n2, tn_eff))

    # Host-side prep: one tiny (1, D) vector and a (1,) SMEM scalar.
    inv_ls = (1.0 / (jnp.abs(jnp.asarray(length_scales, jnp.float32)) + EPS)
              ).reshape(1, d)
    sv = jnp.asarray(signal_variance, jnp.float32).reshape(1,)

    out = pl.pallas_call(
        _ard_kernel,
        out_shape=jax.ShapeDtypeStruct((n1, n2), jnp.float32),
        grid_spec=pltpu.PrefetchScalarGridSpec(
            num_scalar_prefetch=0,
            grid=grid,
            in_specs=[
                pl.BlockSpec(memory_space=pltpu.MemorySpace.SMEM),   # signal variance
                pl.BlockSpec((1, d), lambda i, j: (0, 0)),           # 1 / length scales
                pl.BlockSpec((tm_eff, d), lambda i, j: (i, 0)),      # x1 row tile
                pl.BlockSpec((tn_eff, d), lambda i, j: (j, 0)),      # x2 row tile
            ],
            out_specs=pl.BlockSpec((tm_eff, tn_eff), lambda i, j: (i, j)),
        ),
        compiler_params=pltpu.CompilerParams(
            dimension_semantics=("parallel", "parallel"),
            vmem_limit_bytes=48 << 20,
        ),
    )(sv, inv_ls, x1, x2)

    return out


def ard_reference(x1, x2, length_scales, signal_variance):
    """Pure-JAX reference matching the PyTorch module."""
    ls = jnp.abs(length_scales) + EPS
    a = x1 / ls
    b = x2 / ls
    diff = a[:, None, :] - b[None, :, :]
    sqdist = jnp.sum(diff * diff, axis=-1)
    return jnp.abs(signal_variance)[0] * jnp.exp(-0.5 * sqdist)


if __name__ == "__main__":
    key = jax.random.PRNGKey(0)
    k1, k2, k3, k4, k5, k6 = jax.random.split(key, 6)

    # Deterministic parameter init, matching nn.Parameter shapes in __init__.
    D = 8
    initial_length_scale = 1.0
    initial_signal_variance = 1.0
    length_scales = jnp.ones((D,), jnp.float32) * initial_length_scale
    signal_variance = jnp.array([initial_signal_variance], jnp.float32)

    # Small primary case.
    N1, N2 = 16, 16
    x1 = jax.random.normal(k1, (N1, D), dtype=jnp.float32)
    x2 = jax.random.normal(k2, (N2, D), dtype=jnp.float32)
    out = jax.block_until_ready(
        ard_kernel_forward(x1, x2, length_scales, signal_variance))
    ref = ard_reference(x1, x2, length_scales, signal_variance)
    assert out.shape == (N1, N2)
    assert jnp.allclose(out, ref, atol=1e-4, rtol=1e-5), "mismatch vs reference"

    # Non-tile-aligned shapes exercise the ragged-edge (masked) path.
    M1, M2 = 40, 72
    y1 = jax.random.normal(k3, (M1, D), dtype=jnp.float32)
    y2 = jax.random.normal(k4, (M2, D), dtype=jnp.float32)
    out2 = jax.block_until_ready(
        ard_kernel_forward(y1, y2, length_scales, signal_variance))
    ref2 = ard_reference(y1, y2, length_scales, signal_variance)
    assert out2.shape == (M1, M2)
    assert jnp.allclose(out2, ref2, atol=1e-4, rtol=1e-5), "mismatch vs reference"

    # Multi-tile grid (row split for megacore) + ragged column edge.
    P1, P2 = 136, 200
    z1 = jax.random.normal(k5, (P1, D), dtype=jnp.float32)
    z2 = jax.random.normal(k6, (P2, D), dtype=jnp.float32)
    out3 = jax.block_until_ready(
        ard_kernel_forward(z1, z2, length_scales, signal_variance))
    ref3 = ard_reference(z1, z2, length_scales, signal_variance)
    assert out3.shape == (P1, P2)
    assert jnp.allclose(out3, ref3, atol=1e-4, rtol=1e-5), "mismatch vs reference"

    print("KERNEL_OK")
</pallas_src>

<mosaic_0001>
module attributes {stable_mosaic.version = 11 : i64} {
  func.func @_ard_kernel(%arg0: i32, %arg1: i32, %arg2: memref<1xf32, #tpu.memory_space<smem>>, %arg3: memref<1x8xf32, #tpu.memory_space<vmem>>, %arg4: memref<8x8xf32, #tpu.memory_space<vmem>>, %arg5: memref<128x8xf32, #tpu.memory_space<vmem>>, %arg6: memref<8x128xf32, #tpu.memory_space<vmem>>) attributes {dimension_semantics = [#tpu.dimension_semantics<parallel>, #tpu.dimension_semantics<parallel>], iteration_bounds = array<i64: 2, 1>, scalar_prefetch = 0 : i64, scratch_operands = 0 : i64, tpu.core_type = #tpu.core_type<tc>, window_params = [{transform_indices = @transform_0, window_bounds = array<i64: 1>}, {pipeline_mode = #tpu.pipeline_mode<synchronous>, transform_indices = @transform_1, window_bounds = array<i64: 1, 8>}, {transform_indices = @transform_2, window_bounds = array<i64: 8, 8>}, {transform_indices = @transform_3, window_bounds = array<i64: 128, 8>}, {transform_indices = @transform_4, window_bounds = array<i64: 8, 128>}]} {
    %c0 = arith.constant 0 : index
    %c0_0 = arith.constant 0 : index
    %0 = vector.load %arg3[%c0, %c0_0] : memref<1x8xf32, #tpu.memory_space<vmem>>, vector<1x8xf32>
    %c0_1 = arith.constant 0 : index
    %c0_2 = arith.constant 0 : index
    %1 = vector.load %arg4[%c0_1, %c0_2] : memref<8x8xf32, #tpu.memory_space<vmem>>, vector<8x8xf32>
    %2 = vector.broadcast %0 : vector<1x8xf32> to vector<8x8xf32>
    %3 = arith.mulf %1, %2 : vector<8x8xf32>
    %c0_3 = arith.constant 0 : index
    %c0_4 = arith.constant 0 : index
    %4 = vector.load %arg5[%c0_3, %c0_4] : memref<128x8xf32, #tpu.memory_space<vmem>>, vector<128x8xf32>
    %5 = vector.broadcast %0 : vector<1x8xf32> to vector<128x8xf32>
    %6 = arith.mulf %4, %5 : vector<128x8xf32>
    %cst = arith.constant dense<0.000000e+00> : vector<8x128xf32>
    %7 = tpu.matmul %3, %6, %cst {dimension_numbers = #tpu.dot_dimension_numbers<[1], [1], [0], [0], [0, 0, 1, 0], [], []>} : vector<8x8xf32>, vector<128x8xf32>, vector<8x128xf32> -> vector<8x128xf32>
    %8 = arith.mulf %3, %3 : vector<8x8xf32>
    %cst_5 = arith.constant dense<0.000000e+00> : vector<8xf32>
    %9 = vector.multi_reduction <add>, %8, %cst_5 [1] : vector<8x8xf32> to vector<8xf32>
    %10 = vector.shape_cast %9 : vector<8xf32> to vector<8x1xf32>
    %cst_6 = arith.constant -5.000000e-01 : f32
    %11 = vector.broadcast %cst_6 : f32 to vector<8x1xf32>
    %12 = arith.mulf %11, %10 : vector<8x1xf32>
    %cst_7 = arith.constant 1.000000e+00 : f32
    %13 = vector.broadcast %cst_7 : f32 to vector<1x8xf32>
    %14 = arith.mulf %6, %6 : vector<128x8xf32>
    %cst_8 = arith.constant dense<0.000000e+00> : vector<1x128xf32>
    %15 = tpu.matmul %13, %14, %cst_8 {dimension_numbers = #tpu.dot_dimension_numbers<[1], [1], [0], [0], [0, 0, 1, 0], [], []>} : vector<1x8xf32>, vector<128x8xf32>, vector<1x128xf32> -> vector<1x128xf32>
    %cst_9 = arith.constant -5.000000e-01 : f32
    %16 = vector.broadcast %cst_9 : f32 to vector<1x128xf32>
    %17 = arith.mulf %16, %15 : vector<1x128xf32>
    %18 = vector.broadcast %12 : vector<8x1xf32> to vector<8x128xf32>
    %19 = arith.addf %7, %18 : vector<8x128xf32>
    %20 = vector.broadcast %17 : vector<1x128xf32> to vector<8x128xf32>
    %21 = arith.addf %19, %20 : vector<8x128xf32>
    %cst_10 = arith.constant 0.000000e+00 : f32
    %22 = vector.broadcast %cst_10 : f32 to vector<8x128xf32>
    %23 = arith.minimumf %21, %22 : vector<8x128xf32>
    %c0_11 = arith.constant 0 : index
    %24 = memref.load %arg2[%c0_11] : memref<1xf32, #tpu.memory_space<smem>>
    %25 = math.absf %24 : f32
    %26 = math.exp %23 : vector<8x128xf32>
    %27 = vector.broadcast %25 : f32 to vector<8x128xf32>
    %28 = arith.mulf %27, %26 : vector<8x128xf32>
    %c0_12 = arith.constant 0 : index
    %c0_13 = arith.constant 0 : index
    %29 = vector.load %arg6[%c0_12, %c0_13] : memref<8x128xf32, #tpu.memory_space<vmem>>, vector<8x128xf32>
    tpu.vector_store %arg6[%c0_12, %c0_13], %28 {strides = array<i32>} : memref<8x128xf32, #tpu.memory_space<vmem>>, vector<8x128xf32>,
    return
  }
  func.func @transform_0(%arg0: i32, %arg1: i32) -> i32 {
    %c0_i32 = arith.constant 0 : i32
    %c0_i32_0 = arith.constant 0 : i32
    return %c0_i32 : i32
  }
  func.func @transform_1(%arg0: i32, %arg1: i32) -> (i32, i32) {
    %c0_i32 = arith.constant 0 : i32
    %c0_i32_0 = arith.constant 0 : i32
    %c0_i32_1 = arith.constant 0 : i32
    return %c0_i32, %c0_i32_0 : i32, i32
  }
  func.func @transform_2(%arg0: i32, %arg1: i32) -> (i32, i32) {
    %c0_i32 = arith.constant 0 : i32
    %c0_i32_0 = arith.constant 0 : i32
    return %arg0, %c0_i32 : i32, i32
  }
  func.func @transform_3(%arg0: i32, %arg1: i32) -> (i32, i32) {
    %c0_i32 = arith.constant 0 : i32
    %c0_i32_0 = arith.constant 0 : i32
    return %arg1, %c0_i32 : i32, i32
  }
  func.func @transform_4(%arg0: i32, %arg1: i32) -> (i32, i32) {
    %c0_i32 = arith.constant 0 : i32
    return %arg0, %arg1 : i32, i32
  }
}

</mosaic_0001>

<bundles_post_ra>
// kernel: tpu_custom_call.1
= control target key start
LH: loop header
LB: loop body
LE: loop exit
PB: predicated region body
PF: predicated region fallthrough
CT: control target
= control target key end

     0   :  { %s1290_s0 = inlined_call_operand.<no memory space> [shape: f32[1], index: 0, kind: input, shape index: {}]   ;;  %s1291_s1 = inlined_call_operand.vmem [shape: f32[1,8], index: 1, kind: input, shape index: {}]   ;;  %s1292_s2 = inlined_call_operand.vmem [shape: f32[16,8], index: 2, kind: input, shape index: {}]   ;;  %s1293_s3 = inlined_call_operand.vmem [shape: f32[16,8], index: 3, kind: input, shape index: {}]   ;;  %s1294_s4 = inlined_call_operand.hbm [shape: f32[16,16], index: 4, kind: output, shape index: {}]  }
   0x1   :  { %9 = sst [smem:[#allocation2]] %s1290_s0 }
   0x2   :  { %10 = vsyncpa [#allocation4], 0 }
   0x3   :  { %12 = vsyncpa [#allocation4 + $0x1], 0  ;;  %s1046_s17 = smov 0   ;;  %s1048_s18 = smov 0  }
   0x4   :  { %s1050_s19 = smov 0   ;;  %s1052_s20 = smov 0  }
   0x5   :  { %s1054_s21 = smov 0   ;;  %s1056_s22 = smov 0  }
   0x6 LB: > { %s657_s0 = sadd.s32 4294967295, %s1011_s22   ;;  %s658_s23 = sadd.s32 4294967294, %s1011_s22   ;;  %s1011_s22 = sphi %s1056_s22, %s18_s22   ;;  %s1007_s21 = sphi %s1054_s21, %s1303_s21   ;;  %s1003_s20 = sphi %s1052_s20, %s1302_s20   ;;  %s999_s19 = sphi %s1050_s19, %s1301_s19   ;;  %s995_s18 = sphi %s1048_s18, %s1300_s18   ;;  %s991_s17 = sphi %s1046_s17, %s1299_s17  }
   0x7   : > { %s30_s24 = sadd.s32 1, %s1007_s21  ;;  %s133_s25 = sadd.s32 1, %s999_s19 }
   0x8   : > { %p32_p0 = scmp.ge.s32.totalorder %s30_s24, 2  ;;  %p143_p1 = scmp.ne.s32.totalorder %s999_s19, %s995_s18 }
   0x9   : > { %p144_p2 = scmp.eq.s32.totalorder %s657_s0, 1  ;;  %p149_p3 = scmp.ne.s32.totalorder %s995_s18, %s991_s17 }
   0xa   : > { %s1305_s24 = smov (%p32_p0, %s30_s24), 0  ;;  %p150_p5 = scmp.eq.s32.totalorder %s658_s23, 1 }
   0xb   : > { %p1086_p4 = por %p144_p2, %p143_p1  ;;  %s128_s27 = ssub.s32 %s1007_s21, %s1305_s24 }
   0xc   : > { %p662_p6 = scmp.ge.s32.totalorder %s1011_s22, 1  ;;  %p131_p7 = scmp.eq.s32.totalorder %s128_s27, 0 }
   0xd   : > { %p1093_p8 = por %p150_p5, %p149_p3  ;;  %p194_p9 = scmp.lt.s32.totalorder %s1011_s22, 3 }
   0xe   : > { %s1099_s29 = scalar_select %p131_p7, %s999_s19, %s133_s25  }
   0xf   : > { %p195_p10 = pnand %p662_p6, %p194_p9 }
  0x10   : > { %v1104_v0 = vld [vmem:[%s1291_s1] ss:$0 sm:$0xff] (!%p195_p10)  ;;  %v250_v2 = vld [vmem:[%s1293_s3 + $0x8] sm:$0xff] (!%p195_p10)  ;;  %vm282_vm0 = vcmask (!%p195_p10), 64512   ;;  %v1013_v3 = vmov (!%p195_p10), 0.0|0.0   ;;  %v251_v6 = vld [vmem:[%s1293_s3 + $0x10] sm:$0xff] (!%p195_p10) }
  0x11   : > { %198 = sbr.rel (%p195_p10) target bundleno = 336 (0x150), region = 36  ;;  %v249_v1 = vld [vmem:[%s1293_s3] sm:$0xff] (!%p195_p10)  ;;  %808 = vmatprep.subr.bf16.mxu0 (!%p195_p10), %v1013_v3  ;;  %v266_v5 = vmul.f32 (!%p195_p10), %v1104_v0, %v250_v2  ;;  %840 = vmatprep.subr.bf16.mxu1 (!%p195_p10), %v1013_v3  ;;  %v252_v7 = vld [vmem:[%s1293_s3 + $0x18] sm:$0xff] (!%p195_p10)  ;;  %p226_p11 = scmp.lt.s32.totalorder (!%p195_p10), %s1003_s20, 1  ;;  %vm1125_vm1 = vmpackc.low (!%p195_p10), %vm282_vm0, %vm282_vm0  ;;  %v267_v9 = vmul.f32 (!%p195_p10), %v1104_v0, %v251_v6  ;;  %vm1014_vm2 = vmmov (!%p195_p10), 0   ;;  %v1015_v10 = vmov (!%p195_p10), 0.0  }
  0x12   : > { %v265_v4 = vmul.f32 (!%p195_p10), %v1104_v0, %v249_v1  ;;  %770 = vmatprep.mubr.msk.f32.mxu0 (!%p195_p10), %vm1014_vm2, %v1015_v10  ;;  %805 = vmatprep.mubr.msk.f32.mxu1 (!%p195_p10), %vm1014_vm2, %v1015_v10  ;;  %v268_v14 = vmul.f32 (!%p195_p10), %v1104_v0, %v252_v7  ;;  %v253_v18 = vld [vmem:[%s1293_s3 + $0x20] sm:$0xff] (!%p195_p10)  ;;  %v254_v19 = vld [vmem:[%s1293_s3 + $0x28] sm:$0xff] (!%p195_p10)  ;;  %v255_v29 = vld [vmem:[%s1293_s3 + $0x30] sm:$0xff] (!%p195_p10)  ;;  %s552_s9 = sld [smem:[#allocation2]] (!%p195_p10)  ;;  %s223_s10 = sand.u32 (!%p195_p10), 1, %s995_s18  }
  0x13   : > { %v288_v12 = vmul.f32 (!%p195_p10), %v266_v5, %v266_v5  ;;  %v289_v16 = vmul.f32 (!%p195_p10), %v267_v9, %v267_v9  ;;  %v269_v23 = vmul.f32 (!%p195_p10), %v1104_v0, %v253_v18  ;;  %v270_v24 = vmul.f32 (!%p195_p10), %v1104_v0, %v254_v19  ;;  %v256_v30 = vld [vmem:[%s1293_s3 + $0x38] sm:$0xff] (!%p195_p10)  ;;  %v257_v38 = vld [vmem:[%s1293_s3 + $0x40] sm:$0xff] (!%p195_p10)  ;;  %v258_v39 = vld [vmem:[%s1293_s3 + $0x48] sm:$0xff] (!%p195_p10)  ;;  %s663_s11 = sshll.u32 (!%p195_p10), %s223_s10, 3  ;;  %s701_s13 = sshll.u32 (!%p195_p10), %s1003_s20, 7 }
  0x14   : > { %v287_v11 = vmul.f32 (!%p195_p10), %v265_v4, %v265_v4  ;;  %v841_v13 = vpack.c.bf16 (!%p195_p10), %v266_v5, %v265_v4  ;;  %v290_v17 = vmul.f32 (!%p195_p10), %v268_v14, %v268_v14  ;;  %v845_v20 = vpack.c.bf16 (!%p195_p10), %v268_v14, %v267_v9  ;;  %v259_v46 = vld [vmem:[%s1293_s3 + $0x50] sm:$0xff] (!%p195_p10)  ;;  %v260_v47 = vld [vmem:[%s1293_s3 + $0x58] sm:$0xff] (!%p195_p10)  ;;  %v261_v54 = vld [vmem:[%s1293_s3 + $0x60] sm:$0xff] (!%p195_p10)  ;;  %s560_s25 = scalar_lea.sflag (!%p195_p10), [#allocation4], %s223_s10 }
  0x15   : > { %v291_v27 = vmul.f32 (!%p195_p10), %v269_v23, %v269_v23  ;;  %v292_v28 = vmul.f32 (!%p195_p10), %v270_v24, %v270_v24  ;;  %v849_v32 = vpack.c.bf16 (!%p195_p10), %v270_v24, %v269_v23  ;;  %v271_v34 = vmul.f32 (!%p195_p10), %v1104_v0, %v255_v29  ;;  %v262_v55 = vld [vmem:[%s1293_s3 + $0x68] sm:$0xff] (!%p195_p10)  ;;  %v263_v62 = vld [vmem:[%s1293_s3 + $0x70] sm:$0xff] (!%p195_p10)  ;;  %v264_v63 = vld [vmem:[%s1293_s3 + $0x78] sm:$0xff] (!%p195_p10) }
  0x16   : > { %v809_v15 = vpack.c.bf16 (!%p195_p10), %v288_v12, %v287_v11  ;;  %843 = vmatpush3.bf16.xpose.msk.msra.mxu1 (!%p195_p10), %vm1125_vm1, %v841_v13  ;;  %v813_v22 = vpack.c.bf16 (!%p195_p10), %v290_v17, %v289_v16  ;;  %v272_v35 = vmul.f32 (!%p195_p10), %v1104_v0, %v256_v30  ;;  %v273_v42 = vmul.f32 (!%p195_p10), %v1104_v0, %v257_v38 }
  0x17   : > { %844 = vmatprep.subr.bf16.mxu1 (!%p195_p10), %v1013_v3  ;;  %v817_v33 = vpack.c.bf16 (!%p195_p10), %v292_v28, %v291_v27  ;;  %v293_v36 = vmul.f32 (!%p195_p10), %v271_v34, %v271_v34  ;;  %v274_v43 = vmul.f32 (!%p195_p10), %v1104_v0, %v258_v39  ;;  %v275_v50 = vmul.f32 (!%p195_p10), %v1104_v0, %v259_v46 }
  0x18   : > { %s227_s14 = scalar_select %p226_p11, %s1003_s20, 1  ;;  %811 = vmatpush3.bf16.xpose.msk.msra.mxu0 %vm1125_vm1, %v809_v15  ;;  %v294_v37 = vmul.f32 %v272_v35, %v272_v35  ;;  %v853_v40 = vpack.c.bf16 %v272_v35, %v271_v34  ;;  %v295_v44 = vmul.f32 %v273_v42, %v273_v42  ;;  %v276_v51 = vmul.f32 %v1104_v0, %v260_v47 }
  0x19   : > { %812 = vmatprep.subr.bf16.mxu0 %v1013_v3  ;;  %v296_v45 = vmul.f32 %v274_v43, %v274_v43  ;;  %v857_v48 = vpack.c.bf16 %v274_v43, %v273_v42  ;;  %v297_v52 = vmul.f32 %v275_v50, %v275_v50  ;;  %v277_v58 = vmul.f32 %v1104_v0, %v261_v54  ;;  %s553_s12 = sand.u32 2147483647, %s552_s9  ;;  %s1017_s20 = smov [#allocation3]  }
  0x1a   : > { %s664_s15 = sshll.u32 %s227_s14, 3  ;;  %v821_v41 = vpack.c.bf16 %v294_v37, %v293_v36  ;;  %v298_v53 = vmul.f32 %v276_v51, %v276_v51  ;;  %v861_v56 = vpack.c.bf16 %v276_v51, %v275_v50  ;;  %v278_v59 = vmul.f32 %v1104_v0, %v262_v55  ;;  %s225_s14 = scalar_lea.vmem [#allocation3], %s663_s11 }
  0x1b   : > { %s229_s23 = scalar_lea.vmem %s1292_s2, %s664_s15  ;;  %v825_v49 = vpack.c.bf16 %v296_v45, %v295_v44  ;;  %v299_v60 = vmul.f32 %v277_v58, %v277_v58  ;;  %v279_v4 = vmul.f32 %v1104_v0, %v263_v62  ;;  %v280_v5 = vmul.f32 %v1104_v0, %v264_v63  ;;  %s574_s15 = sshll.u32 %s225_s14, 4  ;;  %s1245_s15 = int_to_ptr.vmem [resolvable:$true] %s574_s15 }
  0x1c   : > { %v241_v21 = vld [vmem:[%s229_s23] sm:$0xff]  ;;  %v829_v57 = vpack.c.bf16 %v298_v53, %v297_v52  ;;  %v300_v61 = vmul.f32 %v278_v59, %v278_v59  ;;  %v865_v1 = vpack.c.bf16 %v278_v59, %v277_v58  ;;  %v546_v11 = vlaneseq  ;;  %s1243_s23 = scalar_lea.hbm %s1294_s4, %s701_s13  ;;  %s933_s27 = scalar_lea.vmem %s1245_s15, 128 }
  0x1d   : > { %v1150_v25 = vmul.f32 %v1104_v0, %v241_v21  ;;  %v301_v6 = vmul.f32 %v279_v4, %v279_v4  ;;  %v302_v7 = vmul.f32 %v280_v5, %v280_v5  ;;  %v869_v9 = vpack.c.bf16 %v280_v5, %v279_v4  ;;  %p934_p12 = scmp.ne.s32.totalorder %s1245_s15, %s933_s27  ;;  %s937_s30 = sshll.u32 %s1017_s20, 4  ;;  %s938_s30 = int_to_ptr.vmem [resolvable:$false] %s937_s30 }
  0x1e   : > { %847 = vmatpush3.bf16.xpose.msk.msra.mxu1 %vm1125_vm1, %v845_v20  ;;  %v833_v2 = vpack.c.bf16 %v300_v61, %v299_v60  ;;  %v1016_v0 = vmov 1.0   ;;  %v547_v13 = vshrl.u32 %v546_v11, 7  ;;  %v556_v24 = vstv %s553_s12  ;;  %s939_s5 = scalar_lea.vmem %s938_s30, 256  ;;  %p940_p1 = scmp.lt.s32.totalorder %s1245_s15, %s938_s30 }
  0x1f   : > { %848 = vmatprep.subr.bf16.mxu1 %v1013_v3  ;;  %v281_v26 = vmul.f32 %v1150_v25, %v1150_v25  ;;  %v837_v10 = vpack.c.bf16 %v302_v7, %v301_v6  ;;  %p935_p13 = pnand %p934_p12, %p1086_p4  ;;  %p941_p2 = scmp.lt.s32.totalorder %s939_s5, %s933_s27 }
  0x20   : > { %815 = vmatpush3.bf16.xpose.msk.msra.mxu0 %vm1125_vm1, %v813_v22  ;;  %v548_v15 = vsub.s32 0, %v547_v13 }
  0x21   : > { %816 = vmatprep.subr.bf16.mxu0 %v1013_v3  ;;  %v283_v31 = vsel %vm282_vm0, %v281_v26, 0.0  ;;  %p936_p0 = pneg %p935_p13  ;;  %p942_p3 = por %p941_p2, %p940_p1 }
  0x22   : > { %284 = vadd.xlane.f32.xlu0 %v283_v31 }
  0x23   : > { %p943_p5 = pnand %p942_p3, %p936_p0 }
  0x26   : > { %851 = vmatpush3.bf16.xpose.msk.msra.mxu1 %vm1125_vm1, %v849_v32 }
  0x27   : > { %852 = vmatprep.subr.bf16.mxu1 %v1013_v3 }
  0x28   : > { %819 = vmatpush3.bf16.xpose.msk.msra.mxu0 %vm1125_vm1, %v817_v33 }
  0x29   : > { %820 = vmatprep.subr.bf16.mxu0 %v1013_v3 }
  0x2e   : > { %855 = vmatpush3.bf16.xpose.msk.msra.mxu1 %vm1125_vm1, %v853_v40 }
  0x2f   : > { %856 = vmatprep.subr.bf16.mxu1 %v1013_v3 }
  0x30   : > { %823 = vmatpush3.bf16.xpose.msk.msra.mxu0 %vm1125_vm1, %v821_v41 }
  0x31   : > { %824 = vmatprep.subr.bf16.mxu0 %v1013_v3 }
  0x36   : > { %859 = vmatpush3.bf16.xpose.msk.msra.mxu1 %vm1125_vm1, %v857_v48 }
  0x37   : > { %860 = vmatprep.subr.bf16.mxu1 %v1013_v3 }
  0x38   : > { %827 = vmatpush3.bf16.xpose.msk.msra.mxu0 %vm1125_vm1, %v825_v49 }
  0x39   : > { %828 = vmatprep.subr.bf16.mxu0 %v1013_v3 }
  0x3e   : > { %863 = vmatpush3.bf16.xpose.msk.msra.mxu1 %vm1125_vm1, %v861_v56 }
  0x3f   : > { %864 = vmatprep.subr.bf16.mxu1 %v1013_v3 }
  0x40   : > { %831 = vmatpush3.bf16.xpose.msk.msra.mxu0 %vm1125_vm1, %v829_v57 }
  0x41   : > { %832 = vmatprep.subr.bf16.mxu0 %v1013_v3 }
  0x46   : > { %867 = vmatpush3.bf16.xpose.msk.msra.mxu1 %vm1125_vm1, %v865_v1 }
  0x47   : > { %868 = vmatprep.subr.bf16.mxu1 %v1013_v3 }
  0x48   : > { %835 = vmatpush3.bf16.xpose.msk.msra.mxu0 %vm1125_vm1, %v833_v2 }
  0x49   : > { %836 = vmatprep.subr.bf16.mxu0 %v1013_v3 }
  0x4e   : > { %871 = vmatpush3.bf16.xpose.msk.msra.mxu1 %vm1125_vm1, %v869_v9 }
  0x50   : > { %839 = vmatpush3.bf16.xpose.msk.msra.mxu0 %vm1125_vm1, %v837_v10 }
  0x55   : > { %806 = vmatmul.mubr.msk.f32.vlgmr.msra.gmra.mrb[0].mxu1 %vm282_vm0, %v1150_v25 }
  0x57   : > { %771 = vmatmul.mubr.msk.f32.vlgmr.msra.gmra.mrb[0].mxu0 %vm282_vm0, %v1016_v0 }
  0xaf   : > { %v285_v12 = vpop.xlane.xlu0 %284 }
  0xb0   : > { %v286_v14 = vmul.f32 -0.5, %v285_v12 }
 0x128   : > { %v542_v3 = vpop.f32.mrb[0].mxu1 }
 0x129   : > { %v807_v16 = vpop.f32.mrb[1].mxu1  ;;  %v543_v8 = vadd.f32 %v542_v3, %v286_v14 }
 0x12a   : > { %v420_v17 = vpop.f32.mrb[0].mxu0 }
 0x12b   : > { %v424_v18 = vmul.f32 -0.5, %v420_v17  ;;  %v772_v19 = vpop.f32.mrb[1].mxu0 }
 0x12d   : > { %v549_v20 = vrot.slane %v424_v18, %v548_v15 }
 0x12f   : > { %v550_v21 = vadd.f32 %v549_v20, %v543_v8 }
 0x131   : > { %v551_v22 = vmin.f32 %v550_v21, 0.0 }
 0x133   : > { %v554_v23 = vmul.f32 1.442695, %v551_v22 }
 0x135   : > { %931 = vpow2.f32 %v554_v23 }
 0x13f   : > { %v932_v25 = vpop.eup %931 }
 0x140   : > { %v557_v26 = vmul.f32 %v932_v25, %v556_v24 }
 0x142   : > { %558 = vst [vmem:[%s225_s14] sm:$0xff] %v557_v26 }
 0x143   : > { %946 = shalt.err (!%p943_p5)
}
 0x144   : > { %s947_s6 = scalar_lea.hbm %s1243_s23, 128  ;;  %s951_s9 = scalar_lea.hbm %s1294_s4, 256 }
 0x145   : > { %p948_p6 = scmp.ne.s32.totalorder %s1243_s23, %s947_s6  ;;  %p952_p10 = scmp.lt.u32.totalorder %s1243_s23, %s1294_s4 }
 0x146   : > { %p953_p11 = scmp.lt.u32.totalorder %s951_s9, %s947_s6  ;;  %p955_p13 = scmp.lt.u32.totalorder %s947_s6, %s1243_s23 }
 0x147   : > { %p949_p7 = pnand %p948_p6, %p1086_p4 }
 0x148   : > { %p954_p12 = por %p953_p11, %p952_p10 }
 0x149   : > { %p950_p9 = pneg %p949_p7 }
 0x14a   : > { %p956_p0 = por %p955_p13, %p954_p12 }
 0x14c   : > { %p957_p1 = pnand %p956_p0, %p950_p9 }
 0x14e   : > { %960 = shalt.err (!%p957_p1)
}
 0x14f   : > { %872 = dma.vmem_to_hbm [thread:$0]  (%p1086_p4), %s1245_s15, 128, %s1243_s23, %s560_s25  }
 0x150 PF: > { %p878_p2 = scmp.ge.s32.totalorder %s1011_s22, 2  ;;  %s586_s12 = sand.u32 1, %s991_s17  }
 0x151   : > { %s587_s13 = scalar_lea.sflag [#allocation4], %s586_s12 }
 0x152   : > { %p875_p3 = pnand %p878_p2, %p1093_p8 }
 0x154   : > { %986 = dma.done.wait (!%p875_p3), %s587_s13, 128  }
 0x155   : > { %988 = vsyncadd (!%p875_p3), %s587_s13, 4294967168  ;;  %s18_s22 = sadd.s32 1, %s1011_s22   ;;  %s1299_s17 = smov %s995_s18 }
 0x156   : > { %p15_p5 = scmp.ge.s32.totalorder %s18_s22, 4   ;;  %s1300_s18 = smov %s999_s19 }
 0x157   : > { %s1301_s19 = smov %s1099_s29  ;;  %s1302_s20 = smov %s1007_s21 }
 0x158   : > { %s1303_s21 = smov %s1305_s24  ;;  %17 = sbr.rel (!%p15_p5) target bundleno = 6 (0x6), region = 74 }
 0x15f   :  { %592 = vsyncpa [#allocation4], 1 }
 0x160   :  { %594 = vsyncpa [#allocation4 + $0x1], 1 }

</bundles_post_ra>
